<compile_context>
chip_gen: v6e
topology: v6e:2x2x1
jax: 0.10.0
libtpu: 0.0.40
codegen_flags: <defaults>
</compile_context>

<pallas_src>
import functools

import jax
import jax.numpy as jnp
from jax import lax
from jax.experimental import pallas as pl
from jax.experimental.pallas import tpu as pltpu


def _pick_tile(dim, prefs):
    """Largest preferred tile that divides `dim`, else the full extent."""
    for p in prefs:
        if p <= dim and dim % p == 0:
            return p
    return dim


# ---------------------------------------------------------------------------
# Kernel 1: tiled matmul (+ optional bias), f32 accumulation
# ---------------------------------------------------------------------------
def _matmul_kernel(x_ref, w_ref, o_ref, acc_ref):
    @pl.when(pl.program_id(2) == 0)
    def _():
        acc_ref[...] = jnp.zeros_like(acc_ref)

    acc_ref[...] += jnp.dot(x_ref[...], w_ref[...],
                            preferred_element_type=jnp.float32)

    @pl.when(pl.program_id(2) == pl.num_programs(2) - 1)
    def _():
        o_ref[...] = acc_ref[...].astype(o_ref.dtype)


def _matmul_bias_kernel(x_ref, w_ref, b_ref, o_ref, acc_ref):
    @pl.when(pl.program_id(2) == 0)
    def _():
        acc_ref[...] = jnp.zeros_like(acc_ref)

    acc_ref[...] += jnp.dot(x_ref[...], w_ref[...],
                            preferred_element_type=jnp.float32)

    @pl.when(pl.program_id(2) == pl.num_programs(2) - 1)
    def _():
        o_ref[...] = (acc_ref[...] + b_ref[...].astype(jnp.float32)
                      ).astype(o_ref.dtype)


# Single-K-tile variants: write straight to the output (no acc scratch).
def _matmul_kernel_1k(x_ref, w_ref, o_ref):
    o_ref[...] = jnp.dot(x_ref[...], w_ref[...],
                         preferred_element_type=jnp.float32).astype(o_ref.dtype)


def _matmul_bias_kernel_1k(x_ref, w_ref, b_ref, o_ref):
    acc = jnp.dot(x_ref[...], w_ref[...], preferred_element_type=jnp.float32)
    o_ref[...] = (acc + b_ref[...].astype(jnp.float32)).astype(o_ref.dtype)


def matmul(x, w, b=None, out_dtype=None):
    """x: (M, K), w: (K, Nout), optional b: (Nout,). Returns (M, Nout)."""
    M, K = x.shape
    Kw, Nout = w.shape
    assert K == Kw
    out_dtype = out_dtype or x.dtype

    tm = _pick_tile(M, (256, 128, 64, 32, 16, 8))
    # 256-multiples fill the 2x256x256 MXU on v6e/v7x (128 fully fills v5e).
    tn = _pick_tile(Nout, (256, 512, 128))
    tk = _pick_tile(K, (512, 256, 128))

    flops = 2 * M * K * Nout
    bytes_acc = (M * K + K * Nout + M * Nout) * x.dtype.itemsize
    cost = pl.CostEstimate(flops=flops, transcendentals=0,
                           bytes_accessed=bytes_acc)
    out_shape = jax.ShapeDtypeStruct((M, Nout), out_dtype)
    b2 = None if b is None else b.reshape(1, Nout)

    if K // tk == 1:
        # Whole contraction fits one tile: no accumulator round trip needed.
        grid = (M // tm, Nout // tn)
        x_spec = pl.BlockSpec((tm, K), lambda i, j: (i, 0))
        w_spec = pl.BlockSpec((K, tn), lambda i, j: (0, j))
        o_spec = pl.BlockSpec((tm, tn), lambda i, j: (i, j))
        params = pltpu.CompilerParams(
            dimension_semantics=("parallel", "parallel"))
        if b is None:
            return pl.pallas_call(
                _matmul_kernel_1k, out_shape=out_shape, grid=grid,
                in_specs=[x_spec, w_spec], out_specs=o_spec,
                compiler_params=params, cost_estimate=cost)(x, w)
        b_spec = pl.BlockSpec((1, tn), lambda i, j: (0, j))
        return pl.pallas_call(
            _matmul_bias_kernel_1k, out_shape=out_shape, grid=grid,
            in_specs=[x_spec, w_spec, b_spec], out_specs=o_spec,
            compiler_params=params, cost_estimate=cost)(x, w, b2)

    grid = (M // tm, Nout // tn, K // tk)
    common = dict(
        out_shape=out_shape,
        grid=grid,
        out_specs=pl.BlockSpec((tm, tn), lambda i, j, k: (i, j)),
        scratch_shapes=[pltpu.VMEM((tm, tn), jnp.float32)],
        compiler_params=pltpu.CompilerParams(
            dimension_semantics=("parallel", "parallel", "arbitrary")),
        cost_estimate=cost,
    )
    x_spec = pl.BlockSpec((tm, tk), lambda i, j, k: (i, k))
    w_spec = pl.BlockSpec((tk, tn), lambda i, j, k: (k, j))

    if b is None:  # qkv_bias=False -> no dead bias DMA / add
        return pl.pallas_call(_matmul_kernel,
                              in_specs=[x_spec, w_spec], **common)(x, w)

    b_spec = pl.BlockSpec((1, tn), lambda i, j, k: (0, j))
    return pl.pallas_call(_matmul_bias_kernel,
                          in_specs=[x_spec, w_spec, b_spec], **common)(x, w, b2)


# ---------------------------------------------------------------------------
# Kernel 2: flash attention over the packed (B, N, 3C) qkv activation.
# Grid = (B, N//tq, N//tkv); all heads of one query tile handled per step,
# with a single lane-dense (tq, C) accumulator / output store per step.
# ---------------------------------------------------------------------------
def _flash_body(q_ref, k_ref, v_ref, o_ref, m_scr, l_scr, acc_scr, *,
                num_heads, head_dim, scale, q_off, k_off, v_off):
    kv_step = pl.program_id(2)
    tq = acc_scr.shape[0]

    @pl.when(kv_step == 0)
    def _init():
        m_scr[...] = jnp.full(m_scr.shape, -jnp.inf, m_scr.dtype)
        l_scr[...] = jnp.zeros(l_scr.shape, l_scr.dtype)
        acc_scr[...] = jnp.zeros(acc_scr.shape, acc_scr.dtype)

    m_prev = m_scr[...]          # (tq, H)
    l_prev = l_scr[...]          # (tq, H)

    m_cols, sum_cols, pv_cols = [], [], []
    for h in range(num_heads):   # unrolled; only (tq, head_dim) live per head
        d0 = h * head_dim
        q_h = q_ref[:, q_off + d0:q_off + d0 + head_dim]
        if scale != 1.0:         # wrapper folds scale into w_qkv -> skipped
            q_h = q_h * scale
        k_h = k_ref[:, k_off + d0:k_off + d0 + head_dim]
        v_h = v_ref[:, v_off + d0:v_off + d0 + head_dim]

        # Contract the shared last dim -> no explicit K transpose through XLU.
        s = lax.dot_general(q_h, k_h,
                            dimension_numbers=(((1,), (1,)), ((), ())),
                            preferred_element_type=jnp.float32)  # (tq, tkv)

        m_new_h = jnp.maximum(m_prev[:, h:h + 1],
                              jnp.max(s, axis=-1, keepdims=True))
        p = jnp.exp(s - m_new_h)                                  # (tq, tkv)
        sum_cols.append(jnp.sum(p, axis=-1, keepdims=True))
        pv_cols.append(jnp.dot(p.astype(v_h.dtype), v_h,
                               preferred_element_type=jnp.float32))  # (tq, D)
        m_cols.append(m_new_h)

    m_new = jnp.concatenate(m_cols, axis=-1)                      # (tq, H)
    alpha = jnp.exp(m_prev - m_new)                               # (tq, H)
    l_scr[...] = alpha * l_prev + jnp.concatenate(sum_cols, axis=-1)
    m_scr[...] = m_new

    # Lane-dense (tq, C) update: one full-width RMW instead of H masked ones.
    alpha_full = jnp.concatenate(
        [jnp.broadcast_to(alpha[:, h:h + 1], (tq, head_dim))
         for h in range(num_heads)], axis=-1)
    pv_full = jnp.concatenate(pv_cols, axis=-1)
    acc_scr[...] = acc_scr[...] * alpha_full + pv_full

    @pl.when(kv_step == pl.num_programs(2) - 1)
    def _finalize():
        inv_l = pl.reciprocal(l_scr[...], approx=True)            # EUP slot
        inv_full = jnp.concatenate(
            [jnp.broadcast_to(inv_l[:, h:h + 1], (tq, head_dim))
             for h in range(num_heads)], axis=-1)
        o_ref[...] = (acc_scr[...] * inv_full).astype(o_ref.dtype)


def _flash_kernel_split(q_ref, k_ref, v_ref, o_ref, m_scr, l_scr, acc_scr, *,
                        num_heads, head_dim, scale):
    _flash_body(q_ref, k_ref, v_ref, o_ref, m_scr, l_scr, acc_scr,
                num_heads=num_heads, head_dim=head_dim, scale=scale,
                q_off=0, k_off=0, v_off=0)


def _flash_kernel_packed(q_ref, kv_ref, o_ref, m_scr, l_scr, acc_scr, *,
                         num_heads, head_dim, scale, C):
    # Unaligned-C fallback: one packed kv block shared between K and V
    # (no duplicate (tkv, 3C) DMAs).
    _flash_body(q_ref, kv_ref, kv_ref, o_ref, m_scr, l_scr, acc_scr,
                num_heads=num_heads, head_dim=head_dim, scale=scale,
                q_off=0, k_off=C, v_off=2 * C)


def flash_sdpa(qkv, num_heads, scale=1.0, out_dtype=None):
    """qkv: (B, N, 3C) packed as [q | k | v] along the last axis (per-head
    contiguous inside each third, matching torch's reshape(B,N,3,H,D)).
    `scale` should be 1.0 if the caller already folded it into q (preferred).
    Returns attention output in (B, N, C) layout (no transposes needed)."""
    B, N, C3 = qkv.shape
    assert C3 % 3 == 0
    C = C3 // 3
    assert C % num_heads == 0
    head_dim = C // num_heads
    out_dtype = out_dtype or qkv.dtype

    # tq=128 keeps the f32 (tq, tkv) score tile small enough to avoid spills;
    # tkv prefers 256 to fill the 2x256x256 MXU (v6e/v7x) and halve KV steps.
    tq = _pick_tile(N, (128, 64, 32, 16, 8))
    tkv = _pick_tile(N, (256, 512, 128, 64, 32, 16, 8))

    grid = (B, N // tq, N // tkv)
    flops = 4 * B * num_heads * N * N * head_dim
    trans = B * num_heads * N * N
    bytes_acc = (B * N * C3 + B * N * C) * qkv.dtype.itemsize
    cost = pl.CostEstimate(flops=flops, transcendentals=trans,
                           bytes_accessed=bytes_acc)
    scratch = [
        pltpu.VMEM((tq, num_heads), jnp.float32),   # running max m
        pltpu.VMEM((tq, num_heads), jnp.float32),   # running sum l
        pltpu.VMEM((tq, C), jnp.float32),           # output accumulator
    ]
    out_specs = pl.BlockSpec((None, tq, C), lambda b, qi, kv: (b, qi, 0))

    if C % 128 == 0:
        # Lane-aligned column blocks: q = block 0, k = block 1, v = block 2.
        kernel = functools.partial(_flash_kernel_split, num_heads=num_heads,
                                   head_dim=head_dim, scale=scale)
        in_specs = [
            pl.BlockSpec((None, tq, C), lambda b, qi, kv: (b, qi, 0)),
            pl.BlockSpec((None, tkv, C), lambda b, qi, kv: (b, kv, 1)),
            pl.BlockSpec((None, tkv, C), lambda b, qi, kv: (b, kv, 2)),
        ]
        operands = (qkv, qkv, qkv)
        in_block_elems = tq * C + 2 * tkv * C
    else:
        # Fallback: full-width q row block + one shared full-width kv block.
        kernel = functools.partial(_flash_kernel_packed, num_heads=num_heads,
                                   head_dim=head_dim, scale=scale, C=C)
        in_specs = [
            pl.BlockSpec((None, tq, C3), lambda b, qi, kv: (b, qi, 0)),
            pl.BlockSpec((None, tkv, C3), lambda b, qi, kv: (b, kv, 0)),
        ]
        operands = (qkv, qkv)
        in_block_elems = tq * C3 + tkv * C3

    # VMEM budget: double-buffered in/out blocks + scratch; keep an explicit
    # limit so the config is checked against v7x's 64 MiB physical VMEM.
    itemsize = jnp.dtype(qkv.dtype).itemsize
    blocks_bytes = 2 * (in_block_elems + tq * C) * itemsize
    scratch_bytes = (2 * tq * num_heads + tq * C) * 4
    vmem_limit = int(min(max(2 * (blocks_bytes + scratch_bytes),
                             32 * 1024 * 1024), 64 * 1024 * 1024))

    return pl.pallas_call(
        kernel,
        out_shape=jax.ShapeDtypeStruct((B, N, C), out_dtype),
        grid=grid,
        in_specs=in_specs,
        out_specs=out_specs,
        scratch_shapes=scratch,
        compiler_params=pltpu.CompilerParams(
            dimension_semantics=("parallel", "parallel", "arbitrary"),
            vmem_limit_bytes=vmem_limit),
        cost_estimate=cost,
    )(*operands)


# ---------------------------------------------------------------------------
# Module wrapper (only free reshapes + one-time weight scale outside kernels)
# ---------------------------------------------------------------------------
def attention_forward(x, params, num_heads):
    B, N, C = x.shape
    head_dim = C // num_heads
    scale = float(head_dim) ** (-0.5)

    # Fold the softmax scale into the q columns of the qkv projection weight
    # (one-time (C, C) scaling) so the flash kernel never rescales q.
    w_qkv = params["w_qkv"].at[:, :C].multiply(scale)
    b_qkv = params.get("b_qkv")
    if b_qkv is not None:
        b_qkv = b_qkv.at[:C].multiply(scale)

    # qkv projection (qkv_bias=False -> no bias input at all)
    x2d = x.reshape(B * N, C)
    qkv = matmul(x2d, w_qkv, b_qkv)                             # (B*N, 3C)
    qkv = qkv.reshape(B, N, 3 * C)                              # free reshape

    # q_norm / k_norm are Identity (qk_norm=False); attn_drop p=0.
    o = flash_sdpa(qkv, num_heads, scale=1.0)                   # (B, N, C)

    # output projection (with bias); proj_drop p=0.
    out = matmul(o.reshape(B * N, C), params["w_proj"], params["b_proj"])
    return out.reshape(B, N, C)


# ---------------------------------------------------------------------------
# Pure-JAX reference for a correctness check
# ---------------------------------------------------------------------------
def attention_reference(x, params, num_heads):
    B, N, C = x.shape
    head_dim = C // num_heads
    scale = head_dim ** (-0.5)
    qkv = x @ params["w_qkv"]
    qkv = qkv.reshape(B, N, 3, num_heads, head_dim).transpose(2, 0, 3, 1, 4)
    q, k, v = qkv[0], qkv[1], qkv[2]
    s = jnp.einsum("bhqd,bhkd->bhqk", q, k) * scale
    p = jax.nn.softmax(s, axis=-1)
    o = jnp.einsum("bhqk,bhkd->bhqd", p, v)
    o = o.transpose(0, 2, 1, 3).reshape(B, N, C)
    return o @ params["w_proj"] + params["b_proj"]


if __name__ == "__main__":
    # C is a multiple of 128 -> lane-aligned q/k/v column blocks; N=256 with
    # tq=128 / tkv=256 gives a (2, 2, 1) attention grid and exercises the
    # single-K-tile projection path (K = C = 128).
    B, N, C = 2, 256, 128
    num_heads = 4  # head_dim = 32

    key = jax.random.PRNGKey(0)
    kx, kq, kp, kb = jax.random.split(key, 4)

    x = jax.random.normal(kx, (B, N, C), dtype=jnp.float32)

    # PyTorch weight (out,in) stored transposed as (in,out) so kernels compute
    # x @ W directly. qkv_bias=False -> no b_qkv at all.
    params = {
        "w_qkv": jax.random.normal(kq, (C, 3 * C), dtype=jnp.float32) * 0.05,
        "w_proj": jax.random.normal(kp, (C, C), dtype=jnp.float32) * 0.05,
        "b_proj": jax.random.normal(kb, (C,), dtype=jnp.float32) * 0.05,
    }

    out = jax.block_until_ready(attention_forward(x, params, num_heads))
    ref = attention_reference(x, params, num_heads)

    assert out.shape == (B, N, C)
    # Tolerance accounts for pl.reciprocal(approx=True) in the softmax
    # finalize and the pre-matmul q scaling (scale folded into w_qkv).
    assert jnp.allclose(out, ref, rtol=5e-3, atol=5e-3), float(
        jnp.max(jnp.abs(out - ref)))

    print("KERNEL_OK")
</pallas_src>

<mosaic_0001>
module attributes {stable_mosaic.version = 11 : i64} {
  func.func @_matmul_kernel_1k(%arg0: i32, %arg1: i32, %arg2: memref<256x128xf32, #tpu.memory_space<vmem>>, %arg3: memref<128x128xf32, #tpu.memory_space<vmem>>, %arg4: memref<256x128xf32, #tpu.memory_space<vmem>>) attributes {dimension_semantics = [#tpu.dimension_semantics<parallel>, #tpu.dimension_semantics<parallel>], iteration_bounds = array<i64: 2, 3>, scalar_prefetch = 0 : i64, scratch_operands = 0 : i64, tpu.core_type = #tpu.core_type<tc>, window_params = [{transform_indices = @transform_0, window_bounds = array<i64: 256, 128>}, {transform_indices = @transform_1, window_bounds = array<i64: 128, 128>}, {transform_indices = @transform_2, window_bounds = array<i64: 256, 128>}]} {
    %c0 = arith.constant 0 : index
    %c0_0 = arith.constant 0 : index
    %0 = vector.load %arg2[%c0, %c0_0] : memref<256x128xf32, #tpu.memory_space<vmem>>, vector<256x128xf32>
    %c0_1 = arith.constant 0 : index
    %c0_2 = arith.constant 0 : index
    %1 = vector.load %arg3[%c0_1, %c0_2] : memref<128x128xf32, #tpu.memory_space<vmem>>, vector<128x128xf32>
    %cst = arith.constant dense<0.000000e+00> : vector<256x128xf32>
    %2 = tpu.matmul %0, %1, %cst {dimension_numbers = #tpu.dot_dimension_numbers<[1], [0], [0], [1], [0, 0, 1, 1], [], []>} : vector<256x128xf32>, vector<128x128xf32>, vector<256x128xf32> -> vector<256x128xf32>
    %c0_3 = arith.constant 0 : index
    %c0_4 = arith.constant 0 : index
    %3 = vector.load %arg4[%c0_3, %c0_4] : memref<256x128xf32, #tpu.memory_space<vmem>>, vector<256x128xf32>
    tpu.vector_store %arg4[%c0_3, %c0_4], %2 {strides = array<i32>} : memref<256x128xf32, #tpu.memory_space<vmem>>, vector<256x128xf32>,
    return
  }
  func.func @transform_0(%arg0: i32, %arg1: i32) -> (i32, i32) {
    %c0_i32 = arith.constant 0 : i32
    %c0_i32_0 = arith.constant 0 : i32
    return %arg0, %c0_i32 : i32, i32
  }
  func.func @transform_1(%arg0: i32, %arg1: i32) -> (i32, i32) {
    %c0_i32 = arith.constant 0 : i32
    %c0_i32_0 = arith.constant 0 : i32
    return %c0_i32, %arg1 : i32, i32
  }
  func.func @transform_2(%arg0: i32, %arg1: i32) -> (i32, i32) {
    %c0_i32 = arith.constant 0 : i32
    return %arg0, %arg1 : i32, i32
  }
}

</mosaic_0001>

<bundles_post_ra>
// kernel: tpu_custom_call.1
= control target key start
LH: loop header
LB: loop body
LE: loop exit
PB: predicated region body
PF: predicated region fallthrough
CT: control target
= control target key end

     0   :  { %s1574_s0 = inlined_call_operand.hbm [shape: f32[512,128], index: 0, kind: input, shape index: {}]   ;;  %s1575_s1 = inlined_call_operand.hbm [shape: f32[128,384], index: 1, kind: input, shape index: {}]   ;;  %s1576_s2 = inlined_call_operand.hbm [shape: f32[512,384], index: 2, kind: output, shape index: {}]  }
   0x1   :  { %1586 = sst [smem:[#allocation17_spill]] %s1574_s0 }
   0x2   :  { %1587 = sst [smem:[#allocation18_spill]] %s1576_s2 }
   0x3   :  { %7 = vsyncpa [#allocation3], 0 }
   0x4   :  { %9 = vsyncpa [#allocation3 + $0x1], 0 }
   0x5   :  { %10 = vsyncpa [#allocation6], 0 }
   0x6   :  { %12 = vsyncpa [#allocation6 + $0x1], 0 }
   0x7   :  { %13 = vsyncpa [#allocation4], 0 }
   0x8   :  { %15 = vsyncpa [#allocation4 + $0x1], 0  ;;  %s1195_s9 = smov 0   ;;  %s1197_s10 = smov 0  }
   0x9   :  { %s1199_s11 = smov 0   ;;  %s1201_s12 = smov 0  }
   0xa   :  { %s1203_s13 = smov 0   ;;  %s1205_s14 = smov 0  }
   0xb   :  { %s1207_s15 = smov 0   ;;  %s1209_s16 = smov 0  }
   0xc   :  { %s1211_s17 = smov 0   ;;  %s1213_s18 = smov 0  }
   0xd   :  { %s1215_s19 = smov 0   ;;  %s1217_s20 = smov 0  }
   0xe   :  { %s1219_s21 = smov 0   ;;  %s1221_s22 = smov 0  }
   0xf LB: > { %1588 = sst [smem:[#allocation11_spill]] %s1153_s18  ;;  %s647_s23 = sadd.s32 4294967295, %s1169_s22   ;;  %s1169_s22 = sphi %s1221_s22, %s21_s22   ;;  %s1165_s21 = sphi %s1219_s21, %s1618_s21   ;;  %s1161_s20 = sphi %s1217_s20, %s1630_s20   ;;  %s1157_s19 = sphi %s1215_s19, %s1616_s19   ;;  %s1153_s18 = sphi %s1213_s18, %s1629_s18   ;;  %s1149_s17 = sphi %s1211_s17, %s1628_s17   ;;  %s1145_s16 = sphi %s1209_s16, %s1627_s16   ;;  %s1141_s15 = sphi %s1207_s15, %s1626_s15   ;;  %s1137_s14 = sphi %s1205_s14, %s1625_s14   ;;  %s1133_s13 = sphi %s1203_s13, %s1624_s13   ;;  %s1129_s12 = sphi %s1201_s12, %s1623_s12   ;;  %s1125_s11 = sphi %s1199_s11, %s1622_s11   ;;  %s1121_s10 = sphi %s1197_s10, %s1621_s10   ;;  %s1117_s9 = sphi %s1195_s9, %s1620_s9  }
  0x10   : > { %1589 = sst [smem:[#allocation12_spill]] %s1165_s21  ;;  %p47_p0 = scmp.ne.s32.totalorder %s1149_s17, %s1145_s16 }
  0x11   : > { %p48_p1 = scmp.eq.s32.totalorder %s1169_s22, 0  ;;  %p53_p2 = scmp.ne.s32.totalorder %s1145_s16, %s1141_s15 }
  0x12   : > { %p1270_p3 = scmp.eq.s32.totalorder %s647_s23, 0  ;;  %p1274_p4 = scmp.eq.s32.totalorder %s647_s23, 5 }
  0x13   : > { %p49_p5 = por %p48_p1, %p47_p0  ;;  %p845_p7 = scmp.lt.s32.totalorder %s1169_s22, 6 }
  0x14   : > { %p1282_p6 = por %p1270_p3, %p53_p2  ;;  %s131_s29 = sand.u32 1, %s1149_s17  }
  0x15   : > { %s666_s30 = sshll.u32 %s1165_s21, 12  ;;  %s651_s3 = sshll.u32 %s131_s29, 8 }
  0x16   : > { %s1593_s0 = sld [smem:[#allocation17_spill]]  ;;  %s135_s7 = scalar_lea.vmem [#allocation2], %s651_s3 }
  0x17   : > { %s142_s8 = sshll.u32 %s135_s7, 4  ;;  %p1294_p8 = pnand %p845_p7, %p49_p5  ;;  %s143_s8 = int_to_ptr.vmem [resolvable:$true] %s142_s8 }
  0x18   : > { %s132_s23 = scalar_lea.sflag [#allocation3], %s131_s29  ;;  %s978_s25 = scalar_lea.vmem %s143_s8, 4096 }
  0x19   : > { %p967_p9 = pneg %p1294_p8  ;;  %p979_p10 = scmp.ne.s32.totalorder %s143_s8, %s978_s25 }
  0x1a   : > { %s1171_s24 = smov [#allocation2]  }
  0x1b   : > { %p981_p11 = pnand %p979_p10, %p967_p9  ;;  %s983_s2 = sshll.u32 %s1171_s24, 4  ;;  %s984_s2 = int_to_ptr.vmem [resolvable:$false] %s983_s2 }
  0x1c   : > { %s141_s6 = scalar_lea.hbm %s1593_s0, %s666_s30  ;;  %s985_s30 = scalar_lea.vmem %s984_s2, 8192 }
  0x1d   : > { %p982_p12 = pneg %p981_p11  ;;  %p986_p13 = scmp.lt.s32.totalorder %s143_s8, %s984_s2 }
  0x1e   : > { %p987_p0 = scmp.lt.s32.totalorder %s985_s30, %s978_s25 }
  0x20   : > { %p988_p2 = por %p987_p0, %p986_p13 }
  0x22   : > { %p989_p5 = pnand %p988_p2, %p982_p12 }
  0x24   : > { %992 = shalt.err (!%p989_p5)
}
  0x25   : > { %s1578_s3 = smov 128   ;;  %s1579_s2 = smov 8  }
  0x26   : > { %837 = dma.hbm_to_vmem [thread:$0]  (!%p1294_p8), %s141_s6, 4096, %s143_s8, %s132_s23, %s1578_s3, %s1578_s3, %s1579_s2  }
  0x27   : > { %p656_p9 = scmp.ge.s32.totalorder %s1169_s22, 1  ;;  %p170_p10 = scmp.lt.s32.totalorder %s1169_s22, 7 }
  0x28   : > { %s648_s25 = sadd.s32 4294967294, %s1169_s22   ;;  %s30_s29 = sadd.s32 1, %s1161_s20 }
  0x29   : > { %p1307_p11 = pnand %p656_p9, %p170_p10  ;;  %s66_s4 = sadd.s32 1, %s1137_s14 }
  0x2a   : > { %p31_p12 = scmp.ge.s32.totalorder %s30_s29, 3  ;;  %p73_p13 = scmp.ne.s32.totalorder %s1137_s14, %s1133_s13 }
  0x2b   : > { %p79_p0 = scmp.ne.s32.totalorder %s1133_s13, %s1129_s12  ;;  %s94_s5 = sadd.s32 1, %s1125_s11 }
  0x2c   : > { %s1632_s29 = smov (%p31_p12, %s30_s29), 0  ;;  %s1597_s6 = sadd.s32 1, %s1165_s21 }
  0x2d   : > { %1596 = sst [smem:[#allocation13_spill]] %s1632_s29  ;;  %s1634_s6 = smov (!%p31_p12, %s1597_s6), %s1165_s21 }
  0x2e   : > { %s63_s7 = ssub.s32 %s1161_s20, %s1632_s29  ;;  %p1328_p8 = por %p73_p13, %p48_p1 }
  0x2f   : > { %p35_p2 = scmp.ge.s32.totalorder %s1634_s6, 2  ;;  %p64_p5 = scmp.eq.s32.totalorder %s63_s7, 0 }
  0x30   : > { %p1334_p9 = por %p79_p0, %p1270_p3  ;;  %p104_p10 = scmp.ne.s32.totalorder %s1125_s11, %s1121_s10 }
  0x31   : > { %s1636_s6 = smov (%p35_p2, %s1634_s6), 0  ;;  %p110_p13 = scmp.ne.s32.totalorder %s1121_s10, %s1117_s9 }
  0x32   : > { %1600 = sst [smem:[#allocation14_spill]] %s1636_s6  ;;  %s37_s23 = ssub.s32 %s1165_s21, %s1636_s6 }
  0x33   : > { %s1343_s15 = scalar_select %p64_p5, %s1137_s14, %s66_s4  }
  0x34   : > { %p1349_p1 = por %p1274_p4, %p104_p10  ;;  %p38_p12 = scmp.eq.s32.totalorder %s37_s23, 0 }
  0x35   : > { %1601 = sst [smem:[#allocation15_spill]] %s1343_s15  ;;  %s91_s26 = sor.u32 %s63_s7, %s37_s23 }
  0x36   : > { %s1602_s30 = scalar_select %p1349_p1, 1, 0 }
  0x37   : > { %p92_p3 = scmp.eq.s32.totalorder %s91_s26, 0  ;;  %s1604_s3 = sadd.s32 1, %s1149_s17 }
  0x38   : > { %1603 = sst [smem:[#allocation16_spill]] %s1602_s30  ;;  %p111_p0 = scmp.eq.s32.totalorder %s648_s25, 5 }
  0x39   : > { %s1358_s2 = scalar_select %p38_p12, %s1149_s17, %s1604_s3  }
  0x3a   : > { %s1361_s0 = scalar_select %p92_p3, %s1125_s11, %s94_s5  }
  0x3b   : > { %s152_s4 = sand.u32 1, %s1137_s14   ;;  %p1364_p2 = por %p111_p0, %p110_p13 }
  0x3c   : > { %s654_s29 = sshll.u32 %s152_s4, 7  ;;  %s655_s6 = sshll.u32 %s1161_s20, 7 }
  0x3d   : > { %s1605_s27 = scalar_select %p1364_p2, 1, 0 }
  0x3e   : > { %s156_s21 = scalar_lea.vmem [#allocation5], %s654_s29  ;;  %s161_s7 = scalar_lea.hbm %s1575_s1, %s655_s6 }
  0x3f   : > { %s162_s15 = sshll.u32 %s156_s21, 4  ;;  %p1376_p4 = pnand %p845_p7, %p1328_p8  ;;  %s163_s15 = int_to_ptr.vmem [resolvable:$true] %s162_s15 }
  0x40   : > { %s153_s25 = scalar_lea.sflag [#allocation6], %s152_s4  ;;  %s1006_s5 = scalar_lea.vmem %s163_s15, 2048 }
  0x41   : > { %p995_p5 = pneg %p1376_p4  ;;  %p1007_p10 = scmp.ne.s32.totalorder %s163_s15, %s1006_s5 }
  0x42   : > { %s1174_s21 = smov [#allocation5]  }
  0x43   : > { %p1009_p12 = pnand %p1007_p10, %p995_p5  ;;  %s1011_s29 = sshll.u32 %s1174_s21, 4  ;;  %s1012_s29 = int_to_ptr.vmem [resolvable:$false] %s1011_s29 }
  0x44   : > { %s1013_s18 = scalar_lea.vmem %s1012_s29, 4096  ;;  %p1014_p13 = scmp.lt.s32.totalorder %s163_s15, %s1012_s29 }
  0x45   : > { %p1010_p3 = pneg %p1009_p12  ;;  %p1015_p0 = scmp.lt.s32.totalorder %s1013_s18, %s1006_s5 }
  0x47   : > { %p1016_p2 = por %p1015_p0, %p1014_p13 }
  0x49   : > { %p1017_p1 = pnand %p1016_p2, %p1010_p3 }
  0x4b   : > { %1020 = shalt.err (!%p1017_p1)
}
  0x4c   : > { %s1175_s6 = smov 384   ;;  %s1607_s8 = smov 8  }
  0x4d   : > { %s1608_s23 = smov 128   ;;  %174 = sbr.rel (%p1307_p11) target bundleno = 359 (0x167), region = 28 }
  0x4e   : > { %840 = dma.hbm_to_vmem [thread:$0]  (!%p1376_p4), %s161_s7, 2048, %s163_s15, %s153_s25, %s1175_s6, %s1608_s23, %s1607_s8  }
  0x4f   : > { %s176_s30 = sand.u32 (!%p1307_p11), 1, %s1145_s16  }
  0x50   : > { %s657_s26 = sshll.u32 (!%p1307_p11), %s176_s30, 8  ;;  %s177_s4 = scalar_lea.sflag (!%p1307_p11), [#allocation3], %s176_s30 }
  0x51   : > { %s1389_s21 = scalar_lea.vmem (!%p1307_p11), [#allocation2], %s657_s26 }
  0x52   : > { %1104 = dma.done.wait (%p1282_p6), %s177_s4, 4096  }
  0x53   : > { %1106 = vsyncadd (%p1282_p6), %s177_s4, 4294963200  ;;  %s185_s3 = sand.u32 1, %s1133_s13  }
  0x54   : > { %s658_s5 = sshll.u32 %s185_s3, 7  ;;  %s186_s15 = scalar_lea.sflag [#allocation6], %s185_s3 }
  0x55   : > { %s1396_s7 = scalar_lea.vmem [#allocation5], %s658_s5 }
  0x56   : > { %1108 = dma.done.wait (%p1334_p9), %s186_s15, 2048  }
  0x57   : > { %1110 = vsyncadd (%p1334_p9), %s186_s15, 4294965248  ;;  %v264_v0 = vld [vmem:[%s1396_s7 + $0x78] sm:$0xff]  ;;  %v263_v1 = vld [vmem:[%s1396_s7 + $0x70] sm:$0xff]  ;;  %s212_s28 = sand.u32 1, %s1121_s10   ;;  %s1609_s25 = sld [smem:[#allocation11_spill]] }
  0x58   : > { %715 = vmatprep.subr.mxu0 %v264_v0  ;;  %795 = vmatprep.subr.mxu1 %v264_v0  ;;  %v262_v2 = vld [vmem:[%s1396_s7 + $0x68] sm:$0xff]  ;;  %v261_v3 = vld [vmem:[%s1396_s7 + $0x60] sm:$0xff]  ;;  %v260_v4 = vld [vmem:[%s1396_s7 + $0x58] sm:$0xff]  ;;  %s659_s24 = sshll.u32 %s212_s28, 8  ;;  %s827_s29 = smul.u32 96, %s1157_s19 }
  0x59   : > { %716 = vmatpush3.msra.mxu0 %v264_v0  ;;  %811 = vmatpush3.msra.mxu1 %v264_v0  ;;  %v259_v5 = vld [vmem:[%s1396_s7 + $0x50] sm:$0xff]  ;;  %v258_v6 = vld [vmem:[%s1396_s7 + $0x48] sm:$0xff]  ;;  %v257_v7 = vld [vmem:[%s1396_s7 + $0x40] sm:$0xff]  ;;  %s1453_s12 = scalar_lea.vmem [#allocation7], %s659_s24  ;;  %s1610_s8 = sld [smem:[#allocation16_spill]] }
  0x5a   : > { %717 = vmatprep.subr.mxu0 %v263_v1  ;;  %796 = vmatprep.subr.mxu1 %v263_v1  ;;  %v256_v8 = vld [vmem:[%s1396_s7 + $0x38] sm:$0xff]  ;;  %v255_v9 = vld [vmem:[%s1396_s7 + $0x30] sm:$0xff]  ;;  %v254_v10 = vld [vmem:[%s1396_s7 + $0x28] sm:$0xff]  ;;  %s538_s6 = sshll.u32 %s1453_s12, 4  ;;  %s1611_s26 = sld [smem:[#allocation18_spill]]  ;;  %s1491_s6 = int_to_ptr.vmem [resolvable:$true] %s538_s6 }
  0x5b   : > { %718 = vmatpush3.msra.mxu0 %v263_v1  ;;  %812 = vmatpush3.msra.mxu1 %v263_v1  ;;  %v253_v11 = vld [vmem:[%s1396_s7 + $0x20] sm:$0xff]  ;;  %v252_v12 = vld [vmem:[%s1396_s7 + $0x18] sm:$0xff]  ;;  %v251_v13 = vld [vmem:[%s1396_s7 + $0x10] sm:$0xff]  ;;  %s1021_s3 = scalar_lea.vmem %s1491_s6, 4096  ;;  %s1176_s5 = smov [#allocation7]  }
  0x5c   : > { %719 = vmatprep.subr.mxu0 %v262_v2  ;;  %797 = vmatprep.subr.mxu1 %v262_v2  ;;  %v250_v14 = vld [vmem:[%s1396_s7 + $0x8] sm:$0xff]  ;;  %v249_v15 = vld [vmem:[%s1396_s7] sm:$0xff]  ;;  %v219_v20 = vld [vmem:[%s1389_s21 + $0x10] sm:$0xff]  ;;  %p1022_p6 = scmp.ne.s32.totalorder %s1491_s6, %s1021_s3  ;;  %s1025_s15 = sshll.u32 %s1176_s5, 4  ;;  %s1026_s15 = int_to_ptr.vmem [resolvable:$false] %s1025_s15 }
  0x5d   : > { %720 = vmatpush3.msra.mxu0 %v262_v2  ;;  %813 = vmatpush3.msra.mxu1 %v262_v2  ;;  %v217_v16 = vld [vmem:[%s1389_s21] sm:$0xff]  ;;  %v218_v18 = vld [vmem:[%s1389_s21 + $0x8] sm:$0xff]  ;;  %v235_v21 = vld [vmem:[%s1389_s21 + $0x90] sm:$0xff]  ;;  %s535_s18 = sadd.s32 %s1609_s25, %s827_s29  ;;  %s1027_s7 = scalar_lea.vmem %s1026_s15, 8192 }
  0x5e   : > { %721 = vmatprep.subr.mxu0 %v261_v3  ;;  %798 = vmatprep.subr.mxu1 %v261_v3  ;;  %v233_v17 = vld [vmem:[%s1389_s21 + $0x80] sm:$0xff]  ;;  %v234_v19 = vld [vmem:[%s1389_s21 + $0x88] sm:$0xff]  ;;  %v220_v22 = vld [vmem:[%s1389_s21 + $0x18] sm:$0xff]  ;;  %s663_s19 = sshll.u32 %s535_s18, 7  ;;  %p1028_p9 = scmp.lt.s32.totalorder %s1491_s6, %s1026_s15 }
  0x5f   : > { %722 = vmatpush3.msra.mxu0 %v261_v3  ;;  %814 = vmatpush3.msra.mxu1 %v261_v3  ;;  %v236_v23 = vld [vmem:[%s1389_s21 + $0x98] sm:$0xff]  ;;  %v221_v24 = vld [vmem:[%s1389_s21 + $0x20] sm:$0xff]  ;;  %v222_v26 = vld [vmem:[%s1389_s21 + $0x28] sm:$0xff]  ;;  %p1612_p7 = scmp.ne.s32.totalorder %s1610_s8, 0  ;;  %p1029_p1 = scmp.lt.s32.totalorder %s1027_s7, %s1021_s3 }
  0x60   : > { %723 = vmatprep.subr.mxu0 %v260_v4  ;;  %799 = vmatprep.subr.mxu1 %v260_v4  ;;  %v237_v25 = vld [vmem:[%s1389_s21 + $0xa0] sm:$0xff]  ;;  %v238_v27 = vld [vmem:[%s1389_s21 + $0xa8] sm:$0xff]  ;;  %v223_v28 = vld [vmem:[%s1389_s21 + $0x30] sm:$0xff]  ;;  %s1489_s4 = scalar_lea.hbm %s1611_s26, %s663_s19 }
  0x61   : > { %724 = vmatpush3.msra.mxu0 %v260_v4  ;;  %815 = vmatpush3.msra.mxu1 %v260_v4  ;;  %v239_v29 = vld [vmem:[%s1389_s21 + $0xb0] sm:$0xff]  ;;  %v224_v30 = vld [vmem:[%s1389_s21 + $0x38] sm:$0xff]  ;;  %v225_v32 = vld [vmem:[%s1389_s21 + $0x40] sm:$0xff]  ;;  %p1023_p11 = pnand %p1022_p6, %p1612_p7  ;;  %p1030_p2 = por %p1029_p1, %p1028_p9 }
  0x62   : > { %725 = vmatprep.subr.mxu0 %v259_v5  ;;  %800 = vmatprep.subr.mxu1 %v259_v5  ;;  %v240_v31 = vld [vmem:[%s1389_s21 + $0xb8] sm:$0xff]  ;;  %v241_v33 = vld [vmem:[%s1389_s21 + $0xc0] sm:$0xff]  ;;  %v226_v34 = vld [vmem:[%s1389_s21 + $0x48] sm:$0xff] }
  0x63   : > { %726 = vmatpush3.msra.mxu0 %v259_v5  ;;  %816 = vmatpush3.msra.mxu1 %v259_v5  ;;  %v242_v35 = vld [vmem:[%s1389_s21 + $0xc8] sm:$0xff]  ;;  %v227_v36 = vld [vmem:[%s1389_s21 + $0x50] sm:$0xff]  ;;  %v228_v38 = vld [vmem:[%s1389_s21 + $0x58] sm:$0xff]  ;;  %p1024_p8 = pneg %p1023_p11 }
  0x64   : > { %727 = vmatprep.subr.mxu0 %v258_v6  ;;  %801 = vmatprep.subr.mxu1 %v258_v6  ;;  %v243_v37 = vld [vmem:[%s1389_s21 + $0xd0] sm:$0xff]  ;;  %v244_v39 = vld [vmem:[%s1389_s21 + $0xd8] sm:$0xff]  ;;  %v229_v40 = vld [vmem:[%s1389_s21 + $0x60] sm:$0xff] }
  0x65   : > { %728 = vmatpush3.msra.mxu0 %v258_v6  ;;  %817 = vmatpush3.msra.mxu1 %v258_v6  ;;  %v245_v41 = vld [vmem:[%s1389_s21 + $0xe0] sm:$0xff]  ;;  %v230_v42 = vld [vmem:[%s1389_s21 + $0x68] sm:$0xff]  ;;  %v231_v44 = vld [vmem:[%s1389_s21 + $0x70] sm:$0xff]  ;;  %p1031_p4 = pnand %p1030_p2, %p1024_p8 }
  0x66   : > { %729 = vmatprep.subr.mxu0 %v257_v7  ;;  %802 = vmatprep.subr.mxu1 %v257_v7  ;;  %v246_v43 = vld [vmem:[%s1389_s21 + $0xe8] sm:$0xff]  ;;  %v247_v45 = vld [vmem:[%s1389_s21 + $0xf0] sm:$0xff]  ;;  %v232_v46 = vld [vmem:[%s1389_s21 + $0x78] sm:$0xff] }
  0x67   : > { %730 = vmatpush3.msra.mxu0 %v257_v7  ;;  %818 = vmatpush3.msra.mxu1 %v257_v7  ;;  %v248_v47 = vld [vmem:[%s1389_s21 + $0xf8] sm:$0xff]  ;;  %s1499_s21 = scalar_lea.sflag [#allocation4], %s212_s28 }
  0x68   : > { %731 = vmatprep.subr.mxu0 %v256_v8  ;;  %803 = vmatprep.subr.mxu1 %v256_v8 }
  0x69   : > { %732 = vmatpush3.msra.mxu0 %v256_v8  ;;  %819 = vmatpush3.msra.mxu1 %v256_v8 }
  0x6a   : > { %733 = vmatprep.subr.mxu0 %v255_v9  ;;  %804 = vmatprep.subr.mxu1 %v255_v9 }
  0x6b   : > { %734 = vmatpush3.msra.mxu0 %v255_v9  ;;  %820 = vmatpush3.msra.mxu1 %v255_v9 }
  0x6c   : > { %735 = vmatprep.subr.mxu0 %v254_v10  ;;  %805 = vmatprep.subr.mxu1 %v254_v10 }
  0x6d   : > { %736 = vmatpush3.msra.mxu0 %v254_v10  ;;  %821 = vmatpush3.msra.mxu1 %v254_v10 }
  0x6e   : > { %737 = vmatprep.subr.mxu0 %v253_v11  ;;  %806 = vmatprep.subr.mxu1 %v253_v11 }
  0x6f   : > { %738 = vmatpush3.msra.mxu0 %v253_v11  ;;  %822 = vmatpush3.msra.mxu1 %v253_v11 }
  0x70   : > { %739 = vmatprep.subr.mxu0 %v252_v12  ;;  %807 = vmatprep.subr.mxu1 %v252_v12 }
  0x71   : > { %740 = vmatpush3.msra.mxu0 %v252_v12  ;;  %823 = vmatpush3.msra.mxu1 %v252_v12 }
  0x72   : > { %741 = vmatprep.subr.mxu0 %v251_v13  ;;  %808 = vmatprep.subr.mxu1 %v251_v13 }
  0x73   : > { %742 = vmatpush3.msra.mxu0 %v251_v13  ;;  %824 = vmatpush3.msra.mxu1 %v251_v13 }
  0x74   : > { %743 = vmatprep.subr.mxu0 %v250_v14  ;;  %809 = vmatprep.subr.mxu1 %v250_v14 }
  0x75   : > { %744 = vmatpush3.msra.mxu0 %v250_v14  ;;  %825 = vmatpush3.msra.mxu1 %v250_v14 }
  0x76   : > { %745 = vmatprep.subr.mxu0 %v249_v15  ;;  %810 = vmatprep.subr.mxu1 %v249_v15 }
  0x77   : > { %746 = vmatpush3.msra.mxu0 %v249_v15  ;;  %826 = vmatpush3.msra.mxu1 %v249_v15 }
  0x78   : > { %747 = vmatprep.mubr.f32.mxu0 %v217_v16  ;;  %771 = vmatprep.mubr.f32.mxu1 %v233_v17 }
  0x79   : > { %748 = vmatmul.mubr.f32.vlgmr.msra.gmra.mxu0 %v218_v18  ;;  %772 = vmatmul.mubr.f32.vlgmr.msra.gmra.mxu1 %v234_v19 }
  0x7a   : > { %750 = vmatprep.mubr.f32.mxu0 %v219_v20  ;;  %774 = vmatprep.mubr.f32.mxu1 %v235_v21 }
  0x7d   : > { %751 = vmatmul.mubr.f32.gmra.mxu0 %v220_v22  ;;  %775 = vmatmul.mubr.f32.gmra.mxu1 %v236_v23 }
  0x7e   : > { %753 = vmatprep.mubr.f32.mxu0 %v221_v24  ;;  %777 = vmatprep.mubr.f32.mxu1 %v237_v25 }
  0x81   : > { %754 = vmatmul.mubr.f32.gmra.mxu0 %v222_v26  ;;  %778 = vmatmul.mubr.f32.gmra.mxu1 %v238_v27 }
  0x82   : > { %756 = vmatprep.mubr.f32.mxu0 %v223_v28  ;;  %780 = vmatprep.mubr.f32.mxu1 %v239_v29 }
  0x85   : > { %757 = vmatmul.mubr.f32.gmra.mxu0 %v224_v30  ;;  %781 = vmatmul.mubr.f32.gmra.mxu1 %v240_v31 }
  0x86   : > { %759 = vmatprep.mubr.f32.mxu0 %v225_v32  ;;  %783 = vmatprep.mubr.f32.mxu1 %v241_v33 }
  0x89   : > { %760 = vmatmul.mubr.f32.gmra.mxu0 %v226_v34  ;;  %784 = vmatmul.mubr.f32.gmra.mxu1 %v242_v35 }
  0x8a   : > { %762 = vmatprep.mubr.f32.mxu0 %v227_v36  ;;  %786 = vmatprep.mubr.f32.mxu1 %v243_v37 }
  0x8d   : > { %763 = vmatmul.mubr.f32.gmra.mxu0 %v228_v38  ;;  %787 = vmatmul.mubr.f32.gmra.mxu1 %v244_v39 }
  0x8e   : > { %765 = vmatprep.mubr.f32.mxu0 %v229_v40  ;;  %789 = vmatprep.mubr.f32.mxu1 %v245_v41 }
  0x91   : > { %766 = vmatmul.mubr.f32.gmra.mxu0 %v230_v42  ;;  %790 = vmatmul.mubr.f32.gmra.mxu1 %v246_v43 }
  0x92   : > { %768 = vmatprep.mubr.f32.mxu0 %v231_v44  ;;  %792 = vmatprep.mubr.f32.mxu1 %v247_v45 }
  0x95   : > { %769 = vmatmul.mubr.f32.gmra.mxu0 %v232_v46  ;;  %793 = vmatmul.mubr.f32.gmra.mxu1 %v248_v47 }
 0x139   : > { %v749_v48 = vpop.f32.mrf.mxu0  ;;  %v773_v49 = vpop.f32.mrf.mxu1 }
 0x13a   : > { %491 = vst [vmem:[%s1453_s12 + $0x8] sm:$0xff] %v749_v48  ;;  %507 = vst [vmem:[%s1453_s12 + $0x88] sm:$0xff] %v773_v49 }
 0x13b   : > { %v331_v50 = vpop.f32.mrf.mxu0  ;;  %v411_v51 = vpop.f32.mrf.mxu1 }
 0x13c   : > { %490 = vst [vmem:[%s1453_s12] sm:$0xff] %v331_v50  ;;  %506 = vst [vmem:[%s1453_s12 + $0x80] sm:$0xff] %v411_v51 }
 0x13d   : > { %v752_v52 = vpop.f32.mrf.mxu0  ;;  %v776_v53 = vpop.f32.mrf.mxu1 }
 0x13e   : > { %493 = vst [vmem:[%s1453_s12 + $0x18] sm:$0xff] %v752_v52  ;;  %509 = vst [vmem:[%s1453_s12 + $0x98] sm:$0xff] %v776_v53 }
 0x13f   : > { %v341_v54 = vpop.f32.mrf.mxu0  ;;  %v421_v55 = vpop.f32.mrf.mxu1 }
 0x140   : > { %492 = vst [vmem:[%s1453_s12 + $0x10] sm:$0xff] %v341_v54  ;;  %508 = vst [vmem:[%s1453_s12 + $0x90] sm:$0xff] %v421_v55 }
 0x141   : > { %v755_v56 = vpop.f32.mrf.mxu0  ;;  %v779_v57 = vpop.f32.mrf.mxu1 }
 0x142   : > { %495 = vst [vmem:[%s1453_s12 + $0x28] sm:$0xff] %v755_v56  ;;  %511 = vst [vmem:[%s1453_s12 + $0xa8] sm:$0xff] %v779_v57 }
 0x143   : > { %v351_v58 = vpop.f32.mrf.mxu0  ;;  %v431_v59 = vpop.f32.mrf.mxu1 }
 0x144   : > { %494 = vst [vmem:[%s1453_s12 + $0x20] sm:$0xff] %v351_v58  ;;  %510 = vst [vmem:[%s1453_s12 + $0xa0] sm:$0xff] %v431_v59 }
 0x145   : > { %v758_v60 = vpop.f32.mrf.mxu0  ;;  %v782_v61 = vpop.f32.mrf.mxu1 }
 0x146   : > { %497 = vst [vmem:[%s1453_s12 + $0x38] sm:$0xff] %v758_v60  ;;  %513 = vst [vmem:[%s1453_s12 + $0xb8] sm:$0xff] %v782_v61 }
 0x147   : > { %v361_v62 = vpop.f32.mrf.mxu0  ;;  %v441_v63 = vpop.f32.mrf.mxu1 }
 0x148   : > { %496 = vst [vmem:[%s1453_s12 + $0x30] sm:$0xff] %v361_v62  ;;  %512 = vst [vmem:[%s1453_s12 + $0xb0] sm:$0xff] %v441_v63 }
 0x149   : > { %v761_v0 = vpop.f32.mrf.mxu0  ;;  %v785_v1 = vpop.f32.mrf.mxu1 }
 0x14a   : > { %499 = vst [vmem:[%s1453_s12 + $0x48] sm:$0xff] %v761_v0  ;;  %515 = vst [vmem:[%s1453_s12 + $0xc8] sm:$0xff] %v785_v1 }
 0x14b   : > { %v371_v2 = vpop.f32.mrf.mxu0  ;;  %v451_v3 = vpop.f32.mrf.mxu1 }
 0x14c   : > { %498 = vst [vmem:[%s1453_s12 + $0x40] sm:$0xff] %v371_v2  ;;  %514 = vst [vmem:[%s1453_s12 + $0xc0] sm:$0xff] %v451_v3 }
 0x14d   : > { %v764_v4 = vpop.f32.mrf.mxu0  ;;  %v788_v5 = vpop.f32.mrf.mxu1 }
 0x14e   : > { %501 = vst [vmem:[%s1453_s12 + $0x58] sm:$0xff] %v764_v4  ;;  %517 = vst [vmem:[%s1453_s12 + $0xd8] sm:$0xff] %v788_v5 }
 0x14f   : > { %v381_v6 = vpop.f32.mrf.mxu0  ;;  %v461_v7 = vpop.f32.mrf.mxu1 }
 0x150   : > { %500 = vst [vmem:[%s1453_s12 + $0x50] sm:$0xff] %v381_v6  ;;  %516 = vst [vmem:[%s1453_s12 + $0xd0] sm:$0xff] %v461_v7 }
 0x151   : > { %v767_v8 = vpop.f32.mrf.mxu0  ;;  %v791_v9 = vpop.f32.mrf.mxu1 }
 0x152   : > { %503 = vst [vmem:[%s1453_s12 + $0x68] sm:$0xff] %v767_v8  ;;  %519 = vst [vmem:[%s1453_s12 + $0xe8] sm:$0xff] %v791_v9 }
 0x153   : > { %v391_v10 = vpop.f32.mrf.mxu0  ;;  %v471_v11 = vpop.f32.mrf.mxu1 }
 0x154   : > { %502 = vst [vmem:[%s1453_s12 + $0x60] sm:$0xff] %v391_v10  ;;  %518 = vst [vmem:[%s1453_s12 + $0xe0] sm:$0xff] %v471_v11 }
 0x155   : > { %v770_v12 = vpop.f32.mrf.mxu0  ;;  %v794_v13 = vpop.f32.mrf.mxu1 }
 0x156   : > { %505 = vst [vmem:[%s1453_s12 + $0x78] sm:$0xff] %v770_v12  ;;  %521 = vst [vmem:[%s1453_s12 + $0xf8] sm:$0xff] %v794_v13 }
 0x157   : > { %v401_v14 = vpop.f32.mrf.mxu0  ;;  %v481_v15 = vpop.f32.mrf.mxu1 }
 0x158   : > { %504 = vst [vmem:[%s1453_s12 + $0x70] sm:$0xff] %v401_v14  ;;  %520 = vst [vmem:[%s1453_s12 + $0xf0] sm:$0xff] %v481_v15 }
 0x159   : > { %1034 = shalt.err (!%p1031_p4)
}
 0x15a   : > { %s1035_s28 = scalar_lea.hbm %s1489_s4, 4096  ;;  %s1039_s25 = scalar_lea.hbm %s1611_s26, 24576 }
 0x15b   : > { %p1036_p5 = scmp.ne.s32.totalorder %s1489_s4, %s1035_s28  ;;  %p1040_p3 = scmp.lt.s32.totalorder %s1489_s4, %s1611_s26 }
 0x15c   : > { %p1041_p13 = scmp.lt.s32.totalorder %s1039_s25, %s1035_s28 }
 0x15d   : > { %p1037_p10 = pnand %p1036_p5, %p1612_p7 }
 0x15e   : > { %p1042_p0 = por %p1041_p13, %p1040_p3 }
 0x15f   : > { %p1038_p12 = pneg %p1037_p10 }
 0x161   : > { %p1043_p6 = pnand %p1042_p0, %p1038_p12 }
 0x163   : > { %1046 = shalt.err (!%p1043_p6)
}
 0x164   : > { %s1177_s19 = smov 128   ;;  %s1178_s23 = smov 384  }
 0x165   : > { %s1179_s30 = smov 8  }
 0x166   : > { %832 = dma.vmem_to_hbm [thread:$0]  (%p1612_p7), %s1491_s6, 4096, %s1489_s4, %s1499_s21, %s1177_s19, %s1178_s23, %s1179_s30  }
 0x167 PF: > { %p846_p11 = scmp.ge.s32.totalorder %s1169_s22, 2  ;;  %s553_s3 = sand.u32 1, %s1117_s9  }
 0x168   : > { %p1613_p8 = scmp.ne.s32.totalorder %s1605_s27, 0  ;;  %s554_s5 = scalar_lea.sflag [#allocation4], %s553_s3 }
 0x16a   : > { %p842_p9 = pnand %p846_p11, %p1613_p8 }
 0x16c   : > { %p843_p1 = pneg %p842_p9 }
 0x16e   : > { %1112 = dma.done.wait (%p843_p1), %s554_s5, 4096  }
 0x16f   : > { %1114 = vsyncadd (%p843_p1), %s554_s5, 4294963200  ;;  %s21_s22 = sadd.s32 1, %s1169_s22   ;;  %s1615_s6 = sld [smem:[#allocation15_spill]] }
 0x170   : > { %p1527_p2 = scmp.ge.s32.totalorder %s21_s22, 8   ;;  %s1616_s19 = sld [smem:[#allocation12_spill]] }
 0x171   : > { %s1617_s27 = sld [smem:[#allocation13_spill]]  ;;  %s1620_s9 = smov %s1121_s10 }
 0x172   : > { %s1618_s21 = sld [smem:[#allocation14_spill]]  ;;  %s1621_s10 = smov %s1125_s11 }
 0x173   : > { %s1622_s11 = smov %s1361_s0  ;;  %s1623_s12 = smov %s1133_s13 }
 0x174   : > { %s1624_s13 = smov %s1137_s14  ;;  %s1626_s15 = smov %s1145_s16 }
 0x175   : > { %s1625_s14 = smov %s1615_s6  ;;  %s1627_s16 = smov %s1149_s17 }
 0x176   : > { %s1628_s17 = smov %s1358_s2  ;;  %s1629_s18 = smov %s1161_s20 }
 0x177   : > { %s1630_s20 = smov %s1617_s27  ;;  %20 = sbr.rel (!%p1527_p2) target bundleno = 15 (0xf), region = 86 }
 0x17c   :  { %559 = vsyncpa [#allocation3], 1 }
 0x17d   :  { %561 = vsyncpa [#allocation3 + $0x1], 1 }
 0x17e   :  { %562 = vsyncpa [#allocation6], 1 }
 0x17f   :  { %564 = vsyncpa [#allocation6 + $0x1], 1 }
 0x180   :  { %565 = vsyncpa [#allocation4], 1 }
 0x181   :  { %567 = vsyncpa [#allocation4 + $0x1], 1 }

</bundles_post_ra>
